<compile_context>
chip_gen: v6e
topology: v6e:2x2x1
jax: 0.10.0
libtpu: 0.0.40
codegen_flags: <defaults>
</compile_context>

<pallas_src>
import functools

import jax
import jax.numpy as jnp
from jax import lax
from jax.experimental import pallas as pl
from jax.experimental.pallas import tpu as pltpu

# Contract the last dim of both operands: x[m, k] · W[n, k] -> [m, n]  (x @ W.T)
_NT = (((1,), (1,)), ((), ()))


def _cotan_kernel(x_ref, w_ref, a_ref, b_ref, o_ref, acc_ref, h_ref, *, alpha):
    """One (i, j, k) grid step of y = x @ W_eff.T + alpha * (x @ A.T) @ B.T."""
    k = pl.program_id(2)

    @pl.when(k == 0)
    def _init():
        acc_ref[...] = jnp.zeros_like(acc_ref)
        h_ref[...] = jnp.zeros_like(h_ref)

    x = x_ref[...]
    # Main path partial sum: x_tile @ W_tile.T (accumulated in f32 over K).
    acc_ref[...] += lax.dot_general(x, w_ref[...], _NT,
                                    preferred_element_type=jnp.float32)
    # Adapter path partial sum: x_tile @ A_tile.T -> (tm, r).
    h_ref[...] += lax.dot_general(x, a_ref[...], _NT,
                                  preferred_element_type=jnp.float32)

    @pl.when(k == pl.num_programs(2) - 1)
    def _finalize():
        # Scale the tiny (tm, r) intermediate instead of the (tm, tn) result.
        h = (alpha * h_ref[...]).astype(b_ref.dtype)
        x2 = lax.dot_general(h, b_ref[...], _NT,
                             preferred_element_type=jnp.float32)
        o_ref[...] = (acc_ref[...] + x2).astype(o_ref.dtype)


def _round_up(v, n):
    return ((v + n - 1) // n) * n


def _pick_tile(dim, candidates):
    for c in candidates:
        if c <= dim and dim % c == 0:
            return c
    return dim  # full extent is always a legal block dim


def cotan_forward(x, w_eff, a, b, alpha, *, tm=256, tn=256, tk=512):
    """y = x @ w_eff.T + alpha * (x @ a.T) @ b.T  via a fused Pallas kernel.

    Layouts match the PyTorch module (no host transposes):
      x     : (m, in_f)
      w_eff : (out_f, in_f)   -- pre_layer.weight after the __init__ update
      a     : (r, in_f)
      b     : (out_f, r)
    bf16 inputs/weights are accepted as-is (accumulation stays f32).
    """
    m, in_f = x.shape
    out_f = w_eff.shape[0]
    r = a.shape[0]

    # Tile selection: large MXU-friendly tiles; fall back to full extents for
    # small / odd dims (a block dim equal to the array dim is always legal).
    tm = min(tm, _round_up(m, 8))
    tn = _pick_tile(out_f, (tn, 256, 128))
    tk = _pick_tile(in_f, (tk, 512, 256, 128))

    # Pad the batch so the grid covers it; slice the padding off afterwards.
    m_pad = _round_up(m, tm)
    if m_pad != m:
        x = jnp.pad(x, ((0, m_pad - m), (0, 0)))

    grid = (m_pad // tm, out_f // tn, in_f // tk)

    itemsize = jnp.dtype(x.dtype).itemsize
    # Double-buffered I/O tiles + f32 scratch accumulators, with headroom.
    vmem_bytes = 2 * itemsize * (tm * tk + tn * tk + r * tk + tn * r + tm * tn)
    vmem_bytes += 4 * (tm * tn + tm * r)
    vmem_limit = int(min(max(2 * vmem_bytes, 16 << 20), 48 << 20))

    kernel = functools.partial(_cotan_kernel, alpha=float(alpha))

    y = pl.pallas_call(
        kernel,
        out_shape=jax.ShapeDtypeStruct((m_pad, out_f), x.dtype),
        grid_spec=pltpu.PrefetchScalarGridSpec(
            num_scalar_prefetch=0,
            grid=grid,
            in_specs=[
                pl.BlockSpec((tm, tk), lambda i, j, k: (i, k)),   # x
                pl.BlockSpec((tn, tk), lambda i, j, k: (j, k)),   # W_eff
                pl.BlockSpec((r, tk), lambda i, j, k: (0, k)),    # A
                pl.BlockSpec((tn, r), lambda i, j, k: (j, 0)),    # B
            ],
            out_specs=pl.BlockSpec((tm, tn), lambda i, j, k: (i, j)),
            scratch_shapes=[
                pltpu.VMEM((tm, tn), jnp.float32),   # main-path accumulator
                pltpu.VMEM((tm, r), jnp.float32),    # adapter intermediate
            ],
        ),
        compiler_params=pltpu.CompilerParams(
            dimension_semantics=("parallel", "parallel", "arbitrary"),
            vmem_limit_bytes=vmem_limit,
        ),
    )(x, w_eff, a, b)

    return y[:m] if m_pad != m else y


if __name__ == "__main__":
    # Small shapes consistent with the module's forward; batch deliberately
    # not a multiple of the batch tile to exercise the padded-grid path.
    batch = 48
    in_features = 256
    out_features = 128
    r = 8
    alpha_param = 1
    alpha = r / alpha_param  # self.alpha = r / alpha

    key = jax.random.PRNGKey(0)
    kx, kw, ka, kb = jax.random.split(key, 4)

    x = jax.random.normal(kx, (batch, in_features), dtype=jnp.float32)
    # pre_layer weight (nn.Linear layout: [out_features, in_features])
    w0 = jax.random.normal(kw, (out_features, in_features), dtype=jnp.float32) * 0.1
    # adapter low-rank factors: adapter.get_value() = B @ A
    a = jax.random.normal(ka, (r, in_features), dtype=jnp.float32) * 0.05
    b = jax.random.normal(kb, (out_features, r), dtype=jnp.float32) * 0.05

    # __init__: pre_layer.weight -= alpha * adapter.get_value()
    w_eff = w0 - alpha * (b @ a)

    y = cotan_forward(x, w_eff, a, b, alpha)
    y = jax.block_until_ready(y)

    # Pure-JAX reference of the PyTorch forward.
    y_ref = x @ w_eff.T + alpha * ((x @ a.T) @ b.T)
    err = float(jnp.max(jnp.abs(y - y_ref)))
    assert jnp.allclose(y, y_ref, atol=1e-4, rtol=1e-4), err

    print("KERNEL_OK")
</pallas_src>

<mosaic_0001>
module attributes {stable_mosaic.version = 11 : i64} {
  func.func @_cotan_kernel(%arg0: i32, %arg1: i32, %arg2: i32, %arg3: memref<48x256xf32, #tpu.memory_space<vmem>>, %arg4: memref<128x256xf32, #tpu.memory_space<vmem>>, %arg5: memref<8x256xf32, #tpu.memory_space<vmem>>, %arg6: memref<128x8xf32, #tpu.memory_space<vmem>>, %arg7: memref<48x128xf32, #tpu.memory_space<vmem>>, %arg8: memref<48x128xf32, #tpu.memory_space<vmem>>, %arg9: memref<48x8xf32, #tpu.memory_space<vmem>>) attributes {dimension_semantics = [#tpu.dimension_semantics<parallel>, #tpu.dimension_semantics<parallel>, #tpu.dimension_semantics<arbitrary>], iteration_bounds = array<i64: 1, 1, 1>, scalar_prefetch = 0 : i64, scratch_operands = 2 : i64, tpu.core_type = #tpu.core_type<tc>, window_params = [{transform_indices = @transform_0, window_bounds = array<i64: 48, 256>}, {transform_indices = @transform_1, window_bounds = array<i64: 128, 256>}, {transform_indices = @transform_2, window_bounds = array<i64: 8, 256>}, {transform_indices = @transform_3, window_bounds = array<i64: 128, 8>}, {transform_indices = @transform_4, window_bounds = array<i64: 48, 128>}]} {
    %c0_i32 = arith.constant 0 : i32
    %0 = arith.cmpi eq, %arg2, %c0_i32 : i32
    %1 = arith.extui %0 : i1 to i32
    %c0_i32_0 = arith.constant 0 : i32
    %2 = arith.cmpi ne, %1, %c0_i32_0 : i32
    scf.if %2 {
      %cst_17 = arith.constant 0.000000e+00 : f32
      %17 = vector.broadcast %cst_17 : f32 to vector<48x128xf32>
      %c0_18 = arith.constant 0 : index
      %c0_19 = arith.constant 0 : index
      %18 = vector.load %arg8[%c0_18, %c0_19] : memref<48x128xf32, #tpu.memory_space<vmem>>, vector<48x128xf32>
      tpu.vector_store %arg8[%c0_18, %c0_19], %17 {strides = array<i32>} : memref<48x128xf32, #tpu.memory_space<vmem>>, vector<48x128xf32>,
      %cst_20 = arith.constant 0.000000e+00 : f32
      %19 = vector.broadcast %cst_20 : f32 to vector<48x8xf32>
      %c0_21 = arith.constant 0 : index
      %c0_22 = arith.constant 0 : index
      %20 = vector.load %arg9[%c0_21, %c0_22] : memref<48x8xf32, #tpu.memory_space<vmem>>, vector<48x8xf32>
      tpu.vector_store %arg9[%c0_21, %c0_22], %19 {strides = array<i32>} : memref<48x8xf32, #tpu.memory_space<vmem>>, vector<48x8xf32>,
    } else {
    }
    %c0 = arith.constant 0 : index
    %c0_1 = arith.constant 0 : index
    %3 = vector.load %arg3[%c0, %c0_1] : memref<48x256xf32, #tpu.memory_space<vmem>>, vector<48x256xf32>
    %c0_2 = arith.constant 0 : index
    %c0_3 = arith.constant 0 : index
    %4 = vector.load %arg8[%c0_2, %c0_3] : memref<48x128xf32, #tpu.memory_space<vmem>>, vector<48x128xf32>
    %c0_4 = arith.constant 0 : index
    %c0_5 = arith.constant 0 : index
    %5 = vector.load %arg4[%c0_4, %c0_5] : memref<128x256xf32, #tpu.memory_space<vmem>>, vector<128x256xf32>
    %cst = arith.constant dense<0.000000e+00> : vector<48x128xf32>
    %6 = tpu.matmul %3, %5, %cst {dimension_numbers = #tpu.dot_dimension_numbers<[1], [1], [0], [0], [0, 0, 1, 0], [], []>} : vector<48x256xf32>, vector<128x256xf32>, vector<48x128xf32> -> vector<48x128xf32>
    %7 = arith.addf %4, %6 : vector<48x128xf32>
    %c0_6 = arith.constant 0 : index
    %c0_7 = arith.constant 0 : index
    %8 = vector.load %arg8[%c0_6, %c0_7] : memref<48x128xf32, #tpu.memory_space<vmem>>, vector<48x128xf32>
    tpu.vector_store %arg8[%c0_6, %c0_7], %7 {strides = array<i32>} : memref<48x128xf32, #tpu.memory_space<vmem>>, vector<48x128xf32>,
    %c0_8 = arith.constant 0 : index
    %c0_9 = arith.constant 0 : index
    %9 = vector.load %arg9[%c0_8, %c0_9] : memref<48x8xf32, #tpu.memory_space<vmem>>, vector<48x8xf32>
    %c0_10 = arith.constant 0 : index
    %c0_11 = arith.constant 0 : index
    %10 = vector.load %arg5[%c0_10, %c0_11] : memref<8x256xf32, #tpu.memory_space<vmem>>, vector<8x256xf32>
    %cst_12 = arith.constant dense<0.000000e+00> : vector<48x8xf32>
    %11 = tpu.matmul %3, %10, %cst_12 {dimension_numbers = #tpu.dot_dimension_numbers<[1], [1], [0], [0], [0, 0, 1, 0], [], []>} : vector<48x256xf32>, vector<8x256xf32>, vector<48x8xf32> -> vector<48x8xf32>
    %12 = arith.addf %9, %11 : vector<48x8xf32>
    %c0_13 = arith.constant 0 : index
    %c0_14 = arith.constant 0 : index
    %13 = vector.load %arg9[%c0_13, %c0_14] : memref<48x8xf32, #tpu.memory_space<vmem>>, vector<48x8xf32>
    tpu.vector_store %arg9[%c0_13, %c0_14], %12 {strides = array<i32>} : memref<48x8xf32, #tpu.memory_space<vmem>>, vector<48x8xf32>,
    %c0_i32_15 = arith.constant 0 : i32
    %14 = arith.cmpi eq, %arg2, %c0_i32_15 : i32
    %15 = arith.extui %14 : i1 to i32
    %c0_i32_16 = arith.constant 0 : i32
    %16 = arith.cmpi ne, %15, %c0_i32_16 : i32
    scf.if %16 {
      %c0_17 = arith.constant 0 : index
      %c0_18 = arith.constant 0 : index
      %17 = vector.load %arg9[%c0_17, %c0_18] : memref<48x8xf32, #tpu.memory_space<vmem>>, vector<48x8xf32>
      %cst_19 = arith.constant 8.000000e+00 : f32
      %18 = vector.broadcast %cst_19 : f32 to vector<48x8xf32>
      %19 = arith.mulf %18, %17 : vector<48x8xf32>
      %c0_20 = arith.constant 0 : index
      %c0_21 = arith.constant 0 : index
      %20 = vector.load %arg6[%c0_20, %c0_21] : memref<128x8xf32, #tpu.memory_space<vmem>>, vector<128x8xf32>
      %cst_22 = arith.constant dense<0.000000e+00> : vector<48x128xf32>
      %21 = tpu.matmul %19, %20, %cst_22 {dimension_numbers = #tpu.dot_dimension_numbers<[1], [1], [0], [0], [0, 0, 1, 0], [], []>} : vector<48x8xf32>, vector<128x8xf32>, vector<48x128xf32> -> vector<48x128xf32>
      %c0_23 = arith.constant 0 : index
      %c0_24 = arith.constant 0 : index
      %22 = vector.load %arg8[%c0_23, %c0_24] : memref<48x128xf32, #tpu.memory_space<vmem>>, vector<48x128xf32>
      %23 = arith.addf %22, %21 : vector<48x128xf32>
      %c0_25 = arith.constant 0 : index
      %c0_26 = arith.constant 0 : index
      %24 = vector.load %arg7[%c0_25, %c0_26] : memref<48x128xf32, #tpu.memory_space<vmem>>, vector<48x128xf32>
      tpu.vector_store %arg7[%c0_25, %c0_26], %23 {strides = array<i32>} : memref<48x128xf32, #tpu.memory_space<vmem>>, vector<48x128xf32>,
    } else {
    }
    return
  }
  func.func @transform_0(%arg0: i32, %arg1: i32, %arg2: i32) -> (i32, i32) {
    %c0_i32 = arith.constant 0 : i32
    return %arg0, %arg2 : i32, i32
  }
  func.func @transform_1(%arg0: i32, %arg1: i32, %arg2: i32) -> (i32, i32) {
    %c0_i32 = arith.constant 0 : i32
    return %arg1, %arg2 : i32, i32
  }
  func.func @transform_2(%arg0: i32, %arg1: i32, %arg2: i32) -> (i32, i32) {
    %c0_i32 = arith.constant 0 : i32
    %c0_i32_0 = arith.constant 0 : i32
    return %c0_i32, %arg2 : i32, i32
  }
  func.func @transform_3(%arg0: i32, %arg1: i32, %arg2: i32) -> (i32, i32) {
    %c0_i32 = arith.constant 0 : i32
    %c0_i32_0 = arith.constant 0 : i32
    return %arg1, %c0_i32 : i32, i32
  }
  func.func @transform_4(%arg0: i32, %arg1: i32, %arg2: i32) -> (i32, i32) {
    %c0_i32 = arith.constant 0 : i32
    return %arg0, %arg1 : i32, i32
  }
}

</mosaic_0001>

<bundles_post_ra>
// kernel: tpu_custom_call.1
= control target key start
LH: loop header
LB: loop body
LE: loop exit
PB: predicated region body
PF: predicated region fallthrough
CT: control target
= control target key end

     0   :  { %9 = vsyncpa [#allocation5], 0  ;;  %s907_s0 = inlined_call_operand.vmem [shape: f32[48,256], index: 0, kind: input, shape index: {}]   ;;  %s908_s1 = inlined_call_operand.hbm [shape: f32[128,256], index: 1, kind: input, shape index: {}]   ;;  %s909_s2 = inlined_call_operand.vmem [shape: f32[8,256], index: 2, kind: input, shape index: {}]   ;;  %s910_s3 = inlined_call_operand.vmem [shape: f32[128,8], index: 3, kind: input, shape index: {}]   ;;  %s911_s4 = inlined_call_operand.hbm [shape: f32[48,128], index: 4, kind: output, shape index: {}]  }
   0x1   :  { %10 = vsyncpa [#allocation6], 0  ;;  %s685_s15 = smov [#allocation4]  }
   0x2   :  { %s18_s16 = sshll.u32 %s685_s15, 4  ;;  %s19_s16 = int_to_ptr.vmem [resolvable:$true] %s18_s16 }
   0x3   :  { %s649_s17 = scalar_lea.vmem %s19_s16, 4096  ;;  %p654_p1 = scmp.lt.s32.totalorder %s19_s16, %s19_s16 }
   0x4   :  { %p650_p0 = scmp.ne.s32.totalorder %s19_s16, %s649_s17  ;;  %p655_p2 = scmp.lt.s32.totalorder %s649_s17, %s649_s17 }
   0x6   :  { %p656_p3 = por %p655_p2, %p654_p1 }
   0x8   :  { %p657_p4 = pnand %p656_p3, %p650_p0 }
   0xa   :  { %660 = shalt.err (!%p657_p4)
}
   0xb   :  { %s686_s18 = smov 256   ;;  %s687_s19 = smov 16  }
   0xc   :  { %24 = dma.hbm_to_vmem [thread:$0]  %s908_s1, 4096, %s19_s16, [#allocation5], %s686_s18, %s686_s18, %s687_s19  }
   0xd   :  { %681 = dma.done.wait [#allocation5], 4096  }
   0xe   :  { %682 = vsyncadd [#allocation5], 4294963200  ;;  %vm42_vm0 = vcmask 64512   ;;  %v688_v0 = vmov 0.0   ;;  %v213_v1 = vld [vmem:[%s909_s2 + $0x8] sm:$0xff]  ;;  %v212_v2 = vld [vmem:[%s909_s2] sm:$0xff] }
   0xf   :  { %43 = vst.msk [vmem:[#allocation3] sm:$0xff] %vm42_vm0, %v688_v0  ;;  %44 = vst.msk [vmem:[#allocation3 + $0x8] sm:$0xff] %vm42_vm0, %v688_v0  ;;  %v50_v3 = vld [vmem:[%s907_s0 + $0x8] sm:$0xff]  ;;  %244 = vmatprep.subr.mxu1 %v213_v1  ;;  %v738_v4 = vld [vmem:[%s907_s0] sm:$0xff] }
  0x10   :  { %45 = vst.msk [vmem:[#allocation3 + $0x10] sm:$0xff] %vm42_vm0, %v688_v0  ;;  %46 = vst.msk [vmem:[#allocation3 + $0x18] sm:$0xff] %vm42_vm0, %v688_v0  ;;  %278 = vmatprep.mubr.f32.mxu1 %v50_v3  ;;  %245 = vmatpush1.xpose.msra.mxu1 %v212_v2  ;;  %v743_v5 = vld [vmem:[%s907_s0 + $0x18] sm:$0xff]  ;;  %v98_v6 = vld [vmem:[#allocation4 + $0xf8] sm:$0xff] }
  0x11   :  { %47 = vst.msk [vmem:[#allocation3 + $0x20] sm:$0xff] %vm42_vm0, %v688_v0  ;;  %48 = vst.msk [vmem:[#allocation3 + $0x28] sm:$0xff] %vm42_vm0, %v688_v0  ;;  %163 = vmatprep.mubr.f32.mxu0 %v50_v3  ;;  %99 = vmatprep.subr.mxu0 %v98_v6  ;;  %v97_v7 = vld [vmem:[#allocation4 + $0xf0] sm:$0xff]  ;;  %v96_v8 = vld [vmem:[#allocation4 + $0xe8] sm:$0xff] }
  0x12   :  { %v352_v9 = vld [vmem:[%s910_s3 + $0x78] sm:$0xff]  ;;  %v753_v10 = vld [vmem:[%s907_s0 + $0x10] sm:$0xff]  ;;  %100 = vmatpush1.xpose.msra.mxu0 %v97_v7  ;;  %v761_v12 = vld [vmem:[%s907_s0 + $0x28] sm:$0xff] }
  0x13   :  { %279 = vmatmul.mubr.f32.vlgmr.msra.gmra.mxu1 %v738_v4  ;;  %v351_v11 = vld [vmem:[%s910_s3 + $0x70] sm:$0xff]  ;;  %101 = vmatprep.subr.mxu0 %v96_v8  ;;  %v94_v14 = vld [vmem:[#allocation4 + $0xd8] sm:$0xff]  ;;  %v771_v15 = vld [vmem:[%s907_s0 + $0x20] sm:$0xff] }
  0x14   :  { %283 = vmatprep.mubr.f32.mxu1 %v743_v5  ;;  %593 = vmatprep.subr.msk.mxu1 %vm42_vm0, %v352_v9  ;;  %v95_v13 = vld [vmem:[#allocation4 + $0xe0] sm:$0xff]  ;;  %v350_v16 = vld [vmem:[%s910_s3 + $0x68] sm:$0xff]  ;;  %v779_v17 = vld [vmem:[%s907_s0 + $0x38] sm:$0xff] }
  0x15   :  { %594 = vmatpush3.xpose.msk.msra.mxu1 %vm42_vm0, %v352_v9  ;;  %v93_v18 = vld [vmem:[#allocation4 + $0xd0] sm:$0xff]  ;;  %v92_v19 = vld [vmem:[#allocation4 + $0xc8] sm:$0xff]  ;;  %v788_v20 = vld [vmem:[%s907_s0 + $0x30] sm:$0xff] }
  0x16   :  { %595 = vmatprep.subr.msk.mxu1 %vm42_vm0, %v351_v11  ;;  %102 = vmatpush1.xpose.msra.mxu0 %v95_v13  ;;  %v349_v21 = vld [vmem:[%s910_s3 + $0x60] sm:$0xff]  ;;  %v796_v22 = vld [vmem:[%s907_s0 + $0x48] sm:$0xff]  ;;  %v91_v23 = vld [vmem:[#allocation4 + $0xc0] sm:$0xff] }
  0x17   :  { %284 = vmatmul.mubr.f32.gmra.mxu1 %v753_v10  ;;  %103 = vmatprep.subr.mxu0 %v94_v14  ;;  %v90_v24 = vld [vmem:[#allocation4 + $0xb8] sm:$0xff]  ;;  %v805_v25 = vld [vmem:[%s907_s0 + $0x40] sm:$0xff]  ;;  %v348_v26 = vld [vmem:[%s910_s3 + $0x58] sm:$0xff] }
  0x18   :  { %288 = vmatprep.mubr.f32.mxu1 %v761_v12  ;;  %v813_v27 = vld [vmem:[%s907_s0 + $0x58] sm:$0xff]  ;;  %v89_v28 = vld [vmem:[#allocation4 + $0xb0] sm:$0xff]  ;;  %v822_v30 = vld [vmem:[%s907_s0 + $0x50] sm:$0xff] }
  0x19   :  { %596 = vmatpush3.xpose.msk.msra.mxu1 %vm42_vm0, %v351_v11  ;;  %v88_v29 = vld [vmem:[#allocation4 + $0xa8] sm:$0xff]  ;;  %v347_v31 = vld [vmem:[%s910_s3 + $0x50] sm:$0xff]  ;;  %v86_v33 = vld [vmem:[#allocation4 + $0x98] sm:$0xff] }
  0x1a   :  { %597 = vmatprep.subr.msk.mxu1 %vm42_vm0, %v350_v16  ;;  %104 = vmatpush1.xpose.msra.mxu0 %v93_v18  ;;  %v87_v32 = vld [vmem:[#allocation4 + $0xa0] sm:$0xff]  ;;  %v346_v34 = vld [vmem:[%s910_s3 + $0x48] sm:$0xff]  ;;  %v85_v35 = vld [vmem:[#allocation4 + $0x90] sm:$0xff] }
  0x1b   :  { %289 = vmatmul.mubr.f32.gmra.mxu1 %v771_v15  ;;  %105 = vmatprep.subr.mxu0 %v92_v19  ;;  %v84_v36 = vld [vmem:[#allocation4 + $0x88] sm:$0xff]  ;;  %v345_v37 = vld [vmem:[%s910_s3 + $0x40] sm:$0xff]  ;;  %v83_v38 = vld [vmem:[#allocation4 + $0x80] sm:$0xff] }
  0x1c   :  { %293 = vmatprep.mubr.f32.mxu1 %v779_v17  ;;  %v82_v39 = vld [vmem:[#allocation4 + $0x78] sm:$0xff]  ;;  %v344_v40 = vld [vmem:[%s910_s3 + $0x38] sm:$0xff]  ;;  %v81_v41 = vld [vmem:[#allocation4 + $0x70] sm:$0xff] }
  0x1d   :  { %598 = vmatpush3.xpose.msk.msra.mxu1 %vm42_vm0, %v350_v16  ;;  %v80_v42 = vld [vmem:[#allocation4 + $0x68] sm:$0xff]  ;;  %v343_v43 = vld [vmem:[%s910_s3 + $0x30] sm:$0xff]  ;;  %v78_v45 = vld [vmem:[#allocation4 + $0x58] sm:$0xff] }
  0x1e   :  { %599 = vmatprep.subr.msk.mxu1 %vm42_vm0, %v349_v21  ;;  %106 = vmatpush1.xpose.msra.mxu0 %v91_v23  ;;  %v79_v44 = vld [vmem:[#allocation4 + $0x60] sm:$0xff]  ;;  %v342_v46 = vld [vmem:[%s910_s3 + $0x28] sm:$0xff]  ;;  %v77_v47 = vld [vmem:[#allocation4 + $0x50] sm:$0xff] }
  0x1f   :  { %294 = vmatmul.mubr.f32.gmra.mxu1 %v788_v20  ;;  %107 = vmatprep.subr.mxu0 %v90_v24  ;;  %v76_v48 = vld [vmem:[#allocation4 + $0x48] sm:$0xff]  ;;  %v341_v49 = vld [vmem:[%s910_s3 + $0x20] sm:$0xff]  ;;  %v75_v50 = vld [vmem:[#allocation4 + $0x40] sm:$0xff] }
  0x20   :  { %298 = vmatprep.mubr.f32.mxu1 %v796_v22  ;;  %v74_v51 = vld [vmem:[#allocation4 + $0x38] sm:$0xff]  ;;  %v73_v52 = vld [vmem:[#allocation4 + $0x30] sm:$0xff]  ;;  %v72_v53 = vld [vmem:[#allocation4 + $0x28] sm:$0xff] }
  0x21   :  { %600 = vmatpush3.xpose.msk.msra.mxu1 %vm42_vm0, %v349_v21  ;;  %v340_v54 = vld [vmem:[%s910_s3 + $0x18] sm:$0xff]  ;;  %v71_v55 = vld [vmem:[#allocation4 + $0x20] sm:$0xff]  ;;  %v70_v56 = vld [vmem:[#allocation4 + $0x18] sm:$0xff] }
  0x22   :  { %601 = vmatprep.subr.msk.mxu1 %vm42_vm0, %v348_v26  ;;  %108 = vmatpush1.xpose.msra.mxu0 %v89_v28  ;;  %v339_v57 = vld [vmem:[%s910_s3 + $0x10] sm:$0xff]  ;;  %v69_v58 = vld [vmem:[#allocation4 + $0x10] sm:$0xff]  ;;  %v68_v59 = vld [vmem:[#allocation4 + $0x8] sm:$0xff] }
  0x23   :  { %299 = vmatmul.mubr.f32.gmra.mxu1 %v805_v25  ;;  %109 = vmatprep.subr.mxu0 %v88_v29  ;;  %v338_v60 = vld [vmem:[%s910_s3 + $0x8] sm:$0xff]  ;;  %v67_v61 = vld [vmem:[#allocation4] sm:$0xff]  ;;  %v337_v62 = vld [vmem:[%s910_s3] sm:$0xff]  ;;  %s689_s3 = smov [#allocation7]  }
  0x24   :  { %303 = vmatprep.mubr.f32.mxu1 %v813_v27  ;;  %v206_v63 = vld [vmem:[#allocation3] sm:$0xff]  ;;  %v207_v3 = vld [vmem:[#allocation3 + $0x8] sm:$0xff]  ;;  %v208_v7 = vld [vmem:[#allocation3 + $0x10] sm:$0xff]  ;;  %s537_s24 = sshll.u32 %s689_s3, 4  ;;  %s538_s24 = int_to_ptr.vmem [resolvable:$true] %s537_s24 }
  0x25   :  { %602 = vmatpush3.xpose.msk.msra.mxu1 %vm42_vm0, %v348_v26  ;;  %v209_v11 = vld [vmem:[#allocation3 + $0x18] sm:$0xff]  ;;  %v211_v23 = vld [vmem:[#allocation3 + $0x28] sm:$0xff]  ;;  %s661_s25 = scalar_lea.vmem %s538_s24, 768  ;;  %p666_p6 = scmp.lt.s32.totalorder %s538_s24, %s538_s24 }
  0x26   :  { %603 = vmatprep.subr.msk.mxu1 %vm42_vm0, %v347_v31  ;;  %110 = vmatpush1.xpose.msra.mxu0 %v87_v32  ;;  %p662_p5 = scmp.ne.s32.totalorder %s538_s24, %s661_s25  ;;  %p667_p7 = scmp.lt.s32.totalorder %s661_s25, %s661_s25 }
  0x27   :  { %304 = vmatmul.mubr.f32.gmra.mxu1 %v822_v30  ;;  %111 = vmatprep.subr.mxu0 %v86_v33 }
  0x28   :  { %p668_p8 = por %p667_p7, %p666_p6 }
  0x29   :  { %604 = vmatpush3.xpose.msk.msra.mxu1 %vm42_vm0, %v347_v31 }
  0x2a   :  { %605 = vmatprep.subr.msk.mxu1 %vm42_vm0, %v346_v34  ;;  %112 = vmatpush1.xpose.msra.mxu0 %v85_v35  ;;  %p669_p9 = pnand %p668_p8, %p662_p5 }
  0x2b   :  { %113 = vmatprep.subr.mxu0 %v84_v36 }
  0x2d   :  { %606 = vmatpush3.xpose.msk.msra.mxu1 %vm42_vm0, %v346_v34 }
  0x2e   :  { %607 = vmatprep.subr.msk.mxu1 %vm42_vm0, %v345_v37  ;;  %114 = vmatpush1.xpose.msra.mxu0 %v83_v38 }
  0x2f   :  { %115 = vmatprep.subr.mxu0 %v82_v39 }
  0x31   :  { %608 = vmatpush3.xpose.msk.msra.mxu1 %vm42_vm0, %v345_v37 }
  0x32   :  { %609 = vmatprep.subr.msk.mxu1 %vm42_vm0, %v344_v40  ;;  %116 = vmatpush1.xpose.msra.mxu0 %v81_v41 }
  0x33   :  { %117 = vmatprep.subr.mxu0 %v80_v42 }
  0x35   :  { %610 = vmatpush3.xpose.msk.msra.mxu1 %vm42_vm0, %v344_v40 }
  0x36   :  { %611 = vmatprep.subr.msk.mxu1 %vm42_vm0, %v343_v43  ;;  %118 = vmatpush1.xpose.msra.mxu0 %v79_v44 }
  0x37   :  { %119 = vmatprep.subr.mxu0 %v78_v45 }
  0x39   :  { %612 = vmatpush3.xpose.msk.msra.mxu1 %vm42_vm0, %v343_v43 }
  0x3a   :  { %613 = vmatprep.subr.msk.mxu1 %vm42_vm0, %v342_v46  ;;  %120 = vmatpush1.xpose.msra.mxu0 %v77_v47 }
  0x3b   :  { %121 = vmatprep.subr.mxu0 %v76_v48 }
  0x3d   :  { %614 = vmatpush3.xpose.msk.msra.mxu1 %vm42_vm0, %v342_v46 }
  0x3e   :  { %615 = vmatprep.subr.msk.mxu1 %vm42_vm0, %v341_v49  ;;  %122 = vmatpush1.xpose.msra.mxu0 %v75_v50 }
  0x3f   :  { %123 = vmatprep.subr.mxu0 %v74_v51 }
  0x41   :  { %616 = vmatpush3.xpose.msk.msra.mxu1 %vm42_vm0, %v341_v49 }
  0x42   :  { %124 = vmatpush1.xpose.msra.mxu0 %v73_v52  ;;  %617 = vmatprep.subr.msk.mxu1 %vm42_vm0, %v340_v54 }
  0x43   :  { %125 = vmatprep.subr.mxu0 %v72_v53 }
  0x45   :  { %618 = vmatpush3.xpose.msk.msra.mxu1 %vm42_vm0, %v340_v54 }
  0x46   :  { %126 = vmatpush1.xpose.msra.mxu0 %v71_v55  ;;  %619 = vmatprep.subr.msk.mxu1 %vm42_vm0, %v339_v57 }
  0x47   :  { %127 = vmatprep.subr.mxu0 %v70_v56 }
  0x49   :  { %620 = vmatpush3.xpose.msk.msra.mxu1 %vm42_vm0, %v339_v57 }
  0x4a   :  { %128 = vmatpush1.xpose.msra.mxu0 %v69_v58  ;;  %621 = vmatprep.subr.msk.mxu1 %vm42_vm0, %v338_v60 }
  0x4b   :  { %129 = vmatprep.subr.mxu0 %v68_v59 }
  0x4d   :  { %622 = vmatpush3.xpose.msk.msra.mxu1 %vm42_vm0, %v338_v60 }
  0x4e   :  { %130 = vmatpush1.xpose.msra.mxu0 %v67_v61  ;;  %623 = vmatprep.subr.msk.mxu1 %vm42_vm0, %v337_v62 }
  0x51   :  { %164 = vmatmul.mubr.f32.vlgmr.msra.gmra.mxu0 %v738_v4  ;;  %624 = vmatpush3.xpose.msk.msra.mxu1 %vm42_vm0, %v337_v62 }
  0x52   :  { %168 = vmatprep.mubr.f32.mxu0 %v743_v5 }
  0x55   :  { %169 = vmatmul.mubr.f32.gmra.mxu0 %v753_v10 }
  0x56   :  { %173 = vmatprep.mubr.f32.mxu0 %v761_v12 }
  0x59   :  { %174 = vmatmul.mubr.f32.gmra.mxu0 %v771_v15 }
  0x5a   :  { %178 = vmatprep.mubr.f32.mxu0 %v779_v17  ;;  %v210_v17 = vld [vmem:[#allocation3 + $0x20] sm:$0xff] }
  0x5d   :  { %179 = vmatmul.mubr.f32.gmra.mxu0 %v788_v20 }
  0x5e   :  { %183 = vmatprep.mubr.f32.mxu0 %v796_v22 }
  0x61   :  { %184 = vmatmul.mubr.f32.gmra.mxu0 %v805_v25 }
  0x62   :  { %188 = vmatprep.mubr.f32.mxu0 %v813_v27 }
  0x65   :  { %189 = vmatmul.mubr.f32.gmra.mxu0 %v822_v30 }
  0xd3   :  { %v280_v0 = vpop.f32.mrf.mxu1 }
  0xd4   :  { %v309_v1 = vadd.f32 %v280_v0, %v206_v63 }
  0xd5   :  { %v282_v2 = vpop.f32.mrf.mxu1 }
  0xd6   :  { %316 = vst.msk [vmem:[#allocation3] sm:$0xff] %vm42_vm0, %v309_v1 }
  0xd7   :  { %v285_v4 = vpop.f32.mrf.mxu1 }
  0xd8   :  { %v310_v5 = vadd.f32 %v285_v4, %v207_v3 }
  0xd9   :  { %v287_v6 = vpop.f32.mrf.mxu1 }
  0xda   :  { %317 = vst.msk [vmem:[#allocation3 + $0x8] sm:$0xff] %vm42_vm0, %v310_v5 }
  0xdb   :  { %v290_v8 = vpop.f32.mrf.mxu1 }
  0xdc   :  { %v311_v9 = vadd.f32 %v290_v8, %v208_v7 }
  0xdd   :  { %v292_v10 = vpop.f32.mrf.mxu1  ;;  %v325_v12 = vld [vmem:[#allocation3] sm:$0xff] }
  0xde   :  { %318 = vst.msk [vmem:[#allocation3 + $0x10] sm:$0xff] %vm42_vm0, %v311_v9  ;;  %v331_v13 = vmul.f32 8.0, %v325_v12 }
  0xdf   :  { %v295_v14 = vpop.f32.mrf.mxu1 }
  0xe0   :  { %v312_v15 = vadd.f32 %v295_v14, %v209_v11  ;;  %625 = vmatprep.mubr.msk.f32.mxu1 %vm42_vm0, %v331_v13 }
  0xe1   :  { %v297_v16 = vpop.f32.mrf.mxu1  ;;  %v326_v18 = vld [vmem:[#allocation3 + $0x8] sm:$0xff] }
  0xe2   :  { %319 = vst.msk [vmem:[#allocation3 + $0x18] sm:$0xff] %vm42_vm0, %v312_v15  ;;  %v332_v19 = vmul.f32 8.0, %v326_v18 }
  0xe3   :  { %v300_v20 = vpop.f32.mrf.mxu1 }
  0xe4   :  { %v313_v21 = vadd.f32 %v300_v20, %v210_v17  ;;  %626 = vmatmul.mubr.msk.f32.vlgmr.msra.gmra.mxu1 %vm42_vm0, %v332_v19 }
  0xe5   :  { %v302_v22 = vpop.f32.mrf.mxu1  ;;  %v327_v24 = vld [vmem:[#allocation3 + $0x10] sm:$0xff] }
  0xe6   :  { %320 = vst.msk [vmem:[#allocation3 + $0x20] sm:$0xff] %vm42_vm0, %v313_v21  ;;  %v333_v25 = vmul.f32 8.0, %v327_v24 }
  0xe7   :  { %v305_v26 = vpop.f32.mrf.mxu1 }
  0xe8   :  { %v314_v27 = vadd.f32 %v305_v26, %v211_v23  ;;  %628 = vmatprep.mubr.msk.f32.mxu1 %vm42_vm0, %v333_v25 }
  0xe9   :  { %v307_v28 = vpop.f32.mrf.mxu1  ;;  %v328_v29 = vld [vmem:[#allocation3 + $0x18] sm:$0xff] }
  0xea   :  { %321 = vst.msk [vmem:[#allocation3 + $0x28] sm:$0xff] %vm42_vm0, %v314_v27  ;;  %v334_v30 = vmul.f32 8.0, %v328_v29 }
  0xec   :  { %629 = vmatmul.mubr.msk.f32.gmra.mxu1 %vm42_vm0, %v334_v30 }
  0xed   :  { %v329_v31 = vld [vmem:[#allocation3 + $0x20] sm:$0xff] }
  0xee   :  { %v335_v32 = vmul.f32 8.0, %v329_v31 }
  0xf0   :  { %631 = vmatprep.mubr.msk.f32.mxu1 %vm42_vm0, %v335_v32 }
  0xf1   :  { %v330_v33 = vld [vmem:[#allocation3 + $0x28] sm:$0xff] }
  0xf2   :  { %v336_v34 = vmul.f32 8.0, %v330_v33 }
  0xf4   :  { %632 = vmatmul.mubr.msk.f32.gmra.mxu1 %vm42_vm0, %v336_v34 }
 0x111   :  { %v165_v35 = vpop.f32.mrf.mxu0 }
 0x113   :  { %v167_v36 = vpop.f32.mrf.mxu0 }
 0x115   :  { %v170_v37 = vpop.f32.mrf.mxu0 }
 0x117   :  { %v172_v38 = vpop.f32.mrf.mxu0 }
 0x119   :  { %v175_v39 = vpop.f32.mrf.mxu0 }
 0x11b   :  { %v177_v40 = vpop.f32.mrf.mxu0 }
 0x11d   :  { %v180_v41 = vpop.f32.mrf.mxu0 }
 0x11f   :  { %v182_v42 = vpop.f32.mrf.mxu0 }
 0x121   :  { %v185_v43 = vpop.f32.mrf.mxu0 }
 0x123   :  { %v187_v44 = vpop.f32.mrf.mxu0 }
 0x125   :  { %v190_v45 = vpop.f32.mrf.mxu0 }
 0x127   :  { %v192_v46 = vpop.f32.mrf.mxu0 }
 0x1a4   :  { %v627_v47 = vpop.f32.mrf.mxu1 }
 0x1a5   :  { %v521_v48 = vadd.f32 %v627_v47, %v170_v37 }
 0x1a6   :  { %v485_v49 = vpop.f32.mrf.mxu1 }
 0x1a7   :  { %527 = vst [vmem:[#allocation7 + $0x8] sm:$0xff] %v521_v48  ;;  %v520_v50 = vadd.f32 %v485_v49, %v165_v35 }
 0x1a9   :  { %526 = vst [vmem:[#allocation7] sm:$0xff] %v520_v50 }
 0x1ac   :  { %v630_v51 = vpop.f32.mrf.mxu1 }
 0x1ad   :  { %v523_v52 = vadd.f32 %v630_v51, %v180_v41 }
 0x1ae   :  { %v495_v53 = vpop.f32.mrf.mxu1 }
 0x1af   :  { %529 = vst [vmem:[#allocation7 + $0x18] sm:$0xff] %v523_v52  ;;  %v522_v54 = vadd.f32 %v495_v53, %v175_v39 }
 0x1b1   :  { %528 = vst [vmem:[#allocation7 + $0x10] sm:$0xff] %v522_v54 }
 0x1b4   :  { %v633_v55 = vpop.f32.mrf.mxu1 }
 0x1b5   :  { %v525_v56 = vadd.f32 %v633_v55, %v190_v45 }
 0x1b6   :  { %v505_v57 = vpop.f32.mrf.mxu1 }
 0x1b7   :  { %531 = vst [vmem:[#allocation7 + $0x28] sm:$0xff] %v525_v56  ;;  %v524_v58 = vadd.f32 %v505_v57, %v185_v43 }
 0x1b9   :  { %530 = vst [vmem:[#allocation7 + $0x20] sm:$0xff] %v524_v58 }
 0x1ba   :  { %672 = shalt.err (!%p669_p9)
}
 0x1bb   :  { %s690_s26 = smov 128   ;;  %s691_s27 = smov 8  }
 0x1bc   :  { %543 = dma.vmem_to_hbm [thread:$0]  %s538_s24, 768, %s911_s4, [#allocation6], %s690_s26, %s690_s26, %s691_s27  }
 0x1bd   :  { %683 = dma.done.wait [#allocation6], 768  }
 0x1be   :  { %684 = vsyncadd [#allocation6], 4294966528 }
 0x1bf   :  { %547 = vsyncpa [#allocation5], 1 }
 0x1c0   :  { %548 = vsyncpa [#allocation6], 1 }

</bundles_post_ra>
